<compile_context>
chip_gen: v7x
topology: tpu7x:2x2x1
jax: 0.10.0
libtpu: 0.0.40
codegen_flags: <defaults>
</compile_context>

<pallas_src>
import functools

import jax
import jax.numpy as jnp
from jax.experimental import pallas as pl
from jax.experimental.pallas import tpu as pltpu


def _pool_out_size(size, k, s):
    """PyTorch MaxPool2d output size: padding=0, dilation=1, ceil_mode=True."""
    out = -((size - k) // -s) + 1          # ceil((size - k) / s) + 1
    if (out - 1) * s >= size:              # last window must start inside input
        out -= 1
    return out


def _maxpool_kernel(x_ref, o_ref, *, k, s, h_out, w_out, fill):
    # x_ref: (1, C_blk, H, W)   one image x channel-block, NCHW order
    # o_ref: (1, C_blk, h_out, w_out)
    x = x_ref[0]                                   # (C_blk, H, W)
    _, H, W = x.shape
    fill_v = jnp.asarray(fill, dtype=x.dtype)

    # ---- pool along W (the lane dim): masked broadcast + lane-reduction ----
    # mask[0, j, 0, w] == True  iff  column w belongs to output window j.
    # Columns past W (ceil-mode overhang) never appear -> matches PyTorch.
    w_pos = jax.lax.broadcasted_iota(jnp.int32, (1, w_out, 1, W), 3)
    w_lo = jax.lax.broadcasted_iota(jnp.int32, (1, w_out, 1, W), 1) * s
    w_mask = (w_pos >= w_lo) & (w_pos < w_lo + k)
    t = jnp.where(w_mask, x[:, None, :, :], fill_v)       # (C_blk, w_out, H, W)
    xw = jnp.max(t, axis=3)                                # (C_blk, w_out, H)

    # ---- pool along H (now the lane dim of xw): same trick ----
    h_pos = jax.lax.broadcasted_iota(jnp.int32, (1, h_out, 1, H), 3)
    h_lo = jax.lax.broadcasted_iota(jnp.int32, (1, h_out, 1, H), 1) * s
    h_mask = (h_pos >= h_lo) & (h_pos < h_lo + k)
    t = jnp.where(h_mask, xw[:, None, :, :], fill_v)       # (C_blk, h_out, w_out, H)
    y = jnp.max(t, axis=3)                                  # (C_blk, h_out, w_out)

    o_ref[0] = y.astype(o_ref.dtype)


def maxpool2d_ceil(x, kernel_size=3, stride=None):
    """nn.MaxPool2d(kernel_size, ceil_mode=True) on NCHW input (padding=0, dilation=1)."""
    if stride is None:
        stride = kernel_size                      # PyTorch default: stride = kernel_size
    N, C, H, W = x.shape
    h_out = _pool_out_size(H, kernel_size, stride)
    w_out = _pool_out_size(W, kernel_size, stride)

    if jnp.issubdtype(x.dtype, jnp.floating):
        fill = float("-inf")
    else:
        fill = int(jnp.iinfo(x.dtype).min)

    # Channel block sized so the input block + masked intermediates (double
    # buffered) stay comfortably under the default scoped VMEM on all gens.
    itemsize = max(jnp.dtype(x.dtype).itemsize, 4)
    per_c_bytes = (H * W + w_out * H * W + h_out * w_out * H + h_out * w_out) * itemsize
    c_blk = max(1, min(C, (4 * 1024 * 1024) // max(per_c_bytes, 1)))
    # TODO(synk): for very large spatial dims (or C >= 128) tile H/W as extra grid axes
    # and/or put channels in the lane dim instead of W to cut the masked-reduce VPU cost.

    kern = functools.partial(
        _maxpool_kernel, k=kernel_size, s=stride, h_out=h_out, w_out=w_out, fill=fill
    )

    return pl.pallas_call(
        kern,
        out_shape=jax.ShapeDtypeStruct((N, C, h_out, w_out), x.dtype),
        grid_spec=pltpu.PrefetchScalarGridSpec(
            num_scalar_prefetch=0,
            grid=(N, pl.cdiv(C, c_blk)),
            in_specs=[pl.BlockSpec((1, c_blk, H, W), lambda n, c: (n, c, 0, 0))],
            out_specs=pl.BlockSpec((1, c_blk, h_out, w_out), lambda n, c: (n, c, 0, 0)),
        ),
        compiler_params=pltpu.CompilerParams(
            dimension_semantics=("parallel", "parallel"),
            vmem_limit_bytes=32 * 1024 * 1024,
        ),
    )(x)


if __name__ == "__main__":
    key = jax.random.PRNGKey(0)
    x = jax.random.normal(key, (2, 4, 16, 16), dtype=jnp.float32)

    out = maxpool2d_ceil(x, kernel_size=3)
    out = jax.block_until_ready(out)

    # Pure-JAX reference for MaxPool2d(3, ceil_mode=True): 16 -> ceil((16-3)/3)+1 = 6
    ref = jax.lax.reduce_window(
        x,
        -jnp.inf,
        jax.lax.max,
        window_dimensions=(1, 1, 3, 3),
        window_strides=(1, 1, 3, 3),
        padding=((0, 0), (0, 0), (0, 2), (0, 2)),
    )
    assert out.shape == (2, 4, 6, 6), out.shape
    assert out.dtype == x.dtype
    assert jnp.allclose(out, ref), "Pallas maxpool mismatch vs reference"

    print("KERNEL_OK")
</pallas_src>

<mosaic_0001>
module attributes {stable_mosaic.version = 11 : i64} {
  func.func @_maxpool_kernel(%arg0: i32, %arg1: i32, %arg2: memref<1x4x16x16xf32, #tpu.memory_space<vmem>>, %arg3: memref<1x4x6x6xf32, #tpu.memory_space<vmem>>) attributes {dimension_semantics = [#tpu.dimension_semantics<parallel>, #tpu.dimension_semantics<parallel>], iteration_bounds = array<i64: 2, 1>, scalar_prefetch = 0 : i64, scratch_operands = 0 : i64, tpu.core_type = #tpu.core_type<tc>, window_params = [{transform_indices = @transform_0, window_bounds = array<i64: 1, 4, 16, 16>}, {transform_indices = @transform_1, window_bounds = array<i64: 1, 4, 6, 6>}]} {
    %c0 = arith.constant 0 : index
    %c0_0 = arith.constant 0 : index
    %c0_1 = arith.constant 0 : index
    %c0_2 = arith.constant 0 : index
    %0 = vector.load %arg2[%c0, %c0_0, %c0_1, %c0_2] : memref<1x4x16x16xf32, #tpu.memory_space<vmem>>, vector<1x4x16x16xf32>
    %1 = vector.shape_cast %0 : vector<1x4x16x16xf32> to vector<4x16x16xf32>
    %2 = tpu.iota {dimensions = array<i32: 3>} : vector<1x6x1x16xi32>
    %3 = tpu.iota {dimensions = array<i32: 1>} : vector<1x6x1x16xi32>
    %c3_i32 = arith.constant 3 : i32
    %4 = vector.broadcast %c3_i32 : i32 to vector<1x6x1x16xi32>
    %5 = arith.muli %3, %4 : vector<1x6x1x16xi32>
    %6 = arith.cmpi sge, %2, %5 : vector<1x6x1x16xi32>
    %c3_i32_3 = arith.constant 3 : i32
    %7 = vector.broadcast %c3_i32_3 : i32 to vector<1x6x1x16xi32>
    %8 = arith.addi %5, %7 : vector<1x6x1x16xi32>
    %9 = arith.cmpi slt, %2, %8 : vector<1x6x1x16xi32>
    %10 = arith.andi %6, %9 : vector<1x6x1x16xi1>
    %11 = vector.shape_cast %1 : vector<4x16x16xf32> to vector<4x1x16x16xf32>
    %cst = arith.constant 0xFF800000 : f32
    %12 = vector.shape_cast %10 : vector<1x6x1x16xi1> to vector<1x6x1x16xi1>
    %13 = vector.broadcast %12 : vector<1x6x1x16xi1> to vector<4x6x16x16xi1>
    %14 = vector.shape_cast %11 : vector<4x1x16x16xf32> to vector<4x1x16x16xf32>
    %15 = vector.broadcast %14 : vector<4x1x16x16xf32> to vector<4x6x16x16xf32>
    %16 = vector.broadcast %cst : f32 to vector<4x6x16x16xf32>
    %17 = arith.select %13, %15, %16 : vector<4x6x16x16xi1>, vector<4x6x16x16xf32>
    %cst_4 = arith.constant dense<0xFF800000> : vector<4x6x16xf32>
    %18 = vector.multi_reduction <maximumf>, %17, %cst_4 [3] : vector<4x6x16x16xf32> to vector<4x6x16xf32>
    %19 = tpu.iota {dimensions = array<i32: 3>} : vector<1x6x1x16xi32>
    %20 = tpu.iota {dimensions = array<i32: 1>} : vector<1x6x1x16xi32>
    %c3_i32_5 = arith.constant 3 : i32
    %21 = vector.broadcast %c3_i32_5 : i32 to vector<1x6x1x16xi32>
    %22 = arith.muli %20, %21 : vector<1x6x1x16xi32>
    %23 = arith.cmpi sge, %19, %22 : vector<1x6x1x16xi32>
    %c3_i32_6 = arith.constant 3 : i32
    %24 = vector.broadcast %c3_i32_6 : i32 to vector<1x6x1x16xi32>
    %25 = arith.addi %22, %24 : vector<1x6x1x16xi32>
    %26 = arith.cmpi slt, %19, %25 : vector<1x6x1x16xi32>
    %27 = arith.andi %23, %26 : vector<1x6x1x16xi1>
    %28 = vector.shape_cast %18 : vector<4x6x16xf32> to vector<4x1x6x16xf32>
    %cst_7 = arith.constant 0xFF800000 : f32
    %29 = vector.shape_cast %27 : vector<1x6x1x16xi1> to vector<1x6x1x16xi1>
    %30 = vector.broadcast %29 : vector<1x6x1x16xi1> to vector<4x6x6x16xi1>
    %31 = vector.shape_cast %28 : vector<4x1x6x16xf32> to vector<4x1x6x16xf32>
    %32 = vector.broadcast %31 : vector<4x1x6x16xf32> to vector<4x6x6x16xf32>
    %33 = vector.broadcast %cst_7 : f32 to vector<4x6x6x16xf32>
    %34 = arith.select %30, %32, %33 : vector<4x6x6x16xi1>, vector<4x6x6x16xf32>
    %cst_8 = arith.constant dense<0xFF800000> : vector<4x6x6xf32>
    %35 = vector.multi_reduction <maximumf>, %34, %cst_8 [3] : vector<4x6x6x16xf32> to vector<4x6x6xf32>
    %c0_9 = arith.constant 0 : index
    %c0_10 = arith.constant 0 : index
    %c0_11 = arith.constant 0 : index
    %c0_12 = arith.constant 0 : index
    %36 = vector.load %arg3[%c0_9, %c0_10, %c0_11, %c0_12] : memref<1x4x6x6xf32, #tpu.memory_space<vmem>>, vector<1x4x6x6xf32>
    %37 = vector.shape_cast %36 : vector<1x4x6x6xf32> to vector<4x6x6xf32>
    %38 = vector.shape_cast %35 : vector<4x6x6xf32> to vector<1x4x6x6xf32>
    tpu.vector_store %arg3[%c0_9, %c0_10, %c0_11, %c0_12], %38 {strides = array<i32>} : memref<1x4x6x6xf32, #tpu.memory_space<vmem>>, vector<1x4x6x6xf32>,
    return
  }
  func.func @transform_0(%arg0: i32, %arg1: i32) -> (i32, i32, i32, i32) {
    %c0_i32 = arith.constant 0 : i32
    %c0_i32_0 = arith.constant 0 : i32
    %c0_i32_1 = arith.constant 0 : i32
    return %arg0, %arg1, %c0_i32, %c0_i32_0 : i32, i32, i32, i32
  }
  func.func @transform_1(%arg0: i32, %arg1: i32) -> (i32, i32, i32, i32) {
    %c0_i32 = arith.constant 0 : i32
    %c0_i32_0 = arith.constant 0 : i32
    %c0_i32_1 = arith.constant 0 : i32
    return %arg0, %arg1, %c0_i32, %c0_i32_0 : i32, i32, i32, i32
  }
}

</mosaic_0001>

<bundles_post_ra>
// kernel: tpu_custom_call.1
= control target key start
LH: loop header
LB: loop body
LE: loop exit
PB: predicated region body
PF: predicated region fallthrough
CT: control target
= control target key end

     0   :  { %6 = vsyncpa [#allocation3], 0  ;;  %s1850_s0 = inlined_call_operand.hbm [shape: f32[2,4,16,16], index: 0, kind: input, shape index: {}]   ;;  %s1851_s1 = inlined_call_operand.vmem [shape: f32[2,4,6,6], index: 1, kind: output, shape index: {}]  }
   0x1   :  { %8 = vsyncpa [#allocation3 + $0x1], 0  ;;  %s1202_s6 = smov 0   ;;  %s1204_s7 = smov 0  }
   0x2   :  { %s1206_s8 = smov 0   ;;  %s1208_s9 = smov 0  }
   0x3   :  { %s1210_s10 = smov 0   ;;  %s1212_s11 = smov 0  }
   0x4 LB: > { %s1035_s12 = sadd.s32 4294967295, %s1187_s11   ;;  %s26_s13 = sadd.s32 1, %s1183_s10  ;;  %s1187_s11 = sphi %s1212_s11, %s14_s11   ;;  %s1183_s10 = sphi %s1210_s10, %s1869_s10   ;;  %s1179_s9 = sphi %s1208_s9, %s1868_s9   ;;  %s1175_s8 = sphi %s1206_s8, %s1867_s8   ;;  %s1171_s7 = sphi %s1204_s7, %s1866_s7   ;;  %s1167_s6 = sphi %s1202_s6, %s1865_s6  }
   0x5   : > { %p28_p0 = scmp.ge.s32.totalorder %s26_s13, 2  ;;  %s35_s14 = sadd.s32 1, %s1175_s8 }
   0x6   : > { %p42_p1 = scmp.ne.s32.totalorder %s1175_s8, %s1171_s7  ;;  %p43_p2 = scmp.eq.s32.totalorder %s1187_s11, 0 }
   0x7   : > { %s1871_s13 = smov (%p28_p0, %s26_s13), 0  ;;  %p48_p4 = scmp.ne.s32.totalorder %s1171_s7, %s1167_s6 }
   0x8   : > { %p1238_p3 = por %p43_p2, %p42_p1  ;;  %s30_s16 = ssub.s32 %s1183_s10, %s1871_s13 }
   0x9   : > { %p49_p5 = scmp.eq.s32.totalorder %s1035_s12, 0  ;;  %p33_p6 = scmp.eq.s32.totalorder %s30_s16, 0 }
   0xa   : > { %p1056_p8 = scmp.lt.s32.totalorder %s1187_s11, 2  ;;  %s100_s19 = sand.u32 1, %s1175_s8  }
   0xb   : > { %p1245_p7 = por %p49_p5, %p48_p4  ;;  %s1048_s20 = sshll.u32 %s1183_s10, 10 }
   0xc   : > { %s1251_s18 = scalar_select %p33_p6, %s1175_s8, %s35_s14  }
   0xd   : > { %s1039_s21 = sshll.u32 %s100_s19, 6  ;;  %s1258_s24 = scalar_lea.hbm %s1850_s0, %s1048_s20 }
   0xe   : > { %s104_s25 = scalar_lea.vmem [#allocation2], %s1039_s21  ;;  %p1262_p9 = pnand %p1056_p8, %p1238_p3 }
   0xf   : > { %s114_s26 = sshll.u32 %s104_s25, 4  ;;  %s1268_s28 = scalar_lea.sflag [#allocation3], %s100_s19  ;;  %s1266_s26 = int_to_ptr.vmem [resolvable:$true] %s114_s26 }
  0x10   : > { %s1107_s29 = scalar_lea.hbm %s1258_s24, 1024  ;;  %p1109_p11 = pneg %p1262_p9 }
  0x11   : > { %p1108_p10 = scmp.ne.s32.totalorder %s1258_s24, %s1107_s29  ;;  %s1112_s3 = scalar_lea.hbm %s1850_s0, 2048 }
  0x12   : > { %p1113_p0 = scmp.lt.u32.totalorder %s1258_s24, %s1850_s0  ;;  %p1114_p1 = scmp.lt.u32.totalorder %s1112_s3, %s1107_s29 }
  0x13   : > { %p1110_p12 = pnand %p1109_p11, %p1108_p10  ;;  %p1116_p3 = scmp.lt.u32.totalorder %s1107_s29, %s1258_s24 }
  0x14   : > { %p1115_p2 = por %p1114_p1, %p1113_p0 }
  0x15   : > { %p1111_p13 = pneg %p1110_p12 }
  0x16   : > { %p1117_p4 = por %p1116_p3, %p1115_p2 }
  0x18   : > { %p1118_p5 = pnand %p1117_p4, %p1111_p13 }
  0x1a   : > { %1121 = shalt.err (!%p1118_p5)
}
  0x1b   : > { %s1122_s6 = scalar_lea.vmem %s1266_s26, 1024  ;;  %s1189_s12 = smov [#allocation2]  }
  0x1c   : > { %p1123_p6 = scmp.ne.s32.totalorder %s1266_s26, %s1122_s6  ;;  %s1127_s14 = sshll.u32 %s1189_s12, 4  ;;  %s1128_s14 = int_to_ptr.vmem [resolvable:$false] %s1127_s14 }
  0x1d   : > { %s1129_s15 = scalar_lea.vmem %s1128_s14, 2048  ;;  %p1130_p12 = scmp.lt.s32.totalorder %s1266_s26, %s1128_s14 }
  0x1e   : > { %p1125_p8 = pnand %p1123_p6, %p1109_p11  ;;  %p1131_p0 = scmp.lt.s32.totalorder %s1129_s15, %s1122_s6 }
  0x20   : > { %p1126_p10 = pneg %p1125_p8  ;;  %p1132_p1 = por %p1131_p0, %p1130_p12 }
  0x22   : > { %p1133_p2 = pnand %p1132_p1, %p1126_p10 }
  0x24   : > { %1136 = shalt.err (!%p1133_p2)
}
  0x25   : > { %s1190_s16 = smov 128   ;;  %s1191_s19 = smov 8  }
  0x26   : > { %1055 = dma.hbm_to_vmem [thread:$0]  (!%p1262_p9), %s1258_s24, 1024, %s1266_s26, %s1268_s28, %s1190_s16, %s1190_s16, %s1191_s19  }
  0x27   : > { %p1042_p11 = scmp.ge.s32.totalorder %s1187_s11, 1  ;;  %p122_p13 = scmp.lt.s32.totalorder %s1187_s11, 3 }
  0x29   : > { %p123_p3 = pnand %p1042_p11, %p122_p13 }
  0x2a   : > { %s128_s20 = sand.u32 (!%p123_p3), 1, %s1171_s7  }
  0x2b   : > { %126 = sbr.rel (%p123_p3) target bundleno = 477 (0x1dd), region = 24  ;;  %s1043_s21 = sshll.u32 (!%p123_p3), %s128_s20, 6 }
  0x2c   : > { %s129_s22 = scalar_lea.sflag (!%p123_p3), [#allocation3], %s128_s20  ;;  %s1299_s23 = scalar_lea.vmem (!%p123_p3), [#allocation2], %s1043_s21 }
  0x32   : > { %1162 = dma.done.wait (%p1245_p7), %s129_s22, 1024  }
  0x33   : > { %1164 = vsyncadd (%p1245_p7), %s129_s22, 4294966272  ;;  %v174_v0 = vlaneseq  ;;  %vm254_vm4 = vcmask 130048   ;;  %v1321_v7 = vld [vmem:[%s1299_s23] sm:$0xff]  ;;  %v1324_v8 = vld [vmem:[%s1299_s23 + $0x8] sm:$0xff]  ;;  %p157_p7 = scmp.lt.s32.totalorder %s1179_s9, 1 }
  0x34   : > { %v1341_v15 = vld [vmem:[%s1299_s23 + $0x18] sm:$0xff]  ;;  %v1344_v16 = vld [vmem:[%s1299_s23 + $0x10] sm:$0xff]  ;;  %v1363_v25 = vld [vmem:[%s1299_s23 + $0x28] sm:$0xff] }
  0x35   : > { %v1305_v1 = vand.u32 127, %v174_v0  ;;  %v448_v2 = vshrl.u32 %v174_v0, 7  ;;  %v1366_v26 = vld [vmem:[%s1299_s23 + $0x20] sm:$0xff]  ;;  %v1379_v31 = vld [vmem:[%s1299_s23 + $0x38] sm:$0xff]  ;;  %v1382_v32 = vld [vmem:[%s1299_s23 + $0x30] sm:$0xff]  ;;  %s1873_s9 = smov (!%p157_p7, %s1179_s9), 1 }
  0x36   : > { %s1049_s17 = sshll.u32 %s1873_s9, 5 }
  0x37   : > { %vm177_vm0 = vcmp.ge.s32.totalorder %v1305_v1, 3  ;;  %vm183_vm1 = vcmp.lt.s32.totalorder %v1305_v1, 6  ;;  %v1310_v3 = vsub.s32 %v1305_v1, %v448_v2  ;;  %v451_v4 = vadd.s32 4294967288, %v1305_v1  ;;  %s164_s25 = scalar_lea.vmem %s1851_s1, %s1049_s17 }
  0x38   : > { %vm1313_vm2 = vmand %vm177_vm0, %vm183_vm1  ;;  %vm182_vm3 = vcmp.lt.s32.totalorder %v1305_v1, 3  ;;  %vm180_vm5 = vcmp.ge.s32.totalorder %v1305_v1, 12  ;;  %vm186_vm6 = vcmp.lt.s32.totalorder %v1305_v1, 15  ;;  %vm181_vm8 = vcmp.ge.s32.totalorder %v1305_v1, 15 }
  0x39   : > { %v1318_v6 = vsub.s32 %v451_v4, %v448_v2  ;;  %v208_v9 = vsel %vm1313_vm2, %v1321_v7, -inf  ;;  %v206_v10 = vsel %vm182_vm3, %v1321_v7, -inf  ;;  %v209_v11 = vsel %vm1313_vm2, %v1324_v8, -inf  ;;  %vm1384_vm7 = vmand %vm180_vm5, %vm186_vm6 }
  0x3a   : > { %v207_v12 = vsel %vm182_vm3, %v1324_v8, -inf  ;;  %v261_v13 = vsel %vm254_vm4, %v208_v9, -inf  ;;  %v255_v14 = vsel %vm254_vm4, %v206_v10, -inf  ;;  %v264_v17 = vsel %vm254_vm4, %v209_v11, -inf }
  0x3b   : > { %262 = vmax.xlane.f32.xlu1 %v261_v13  ;;  %256 = vmax.xlane.f32.xlu0 %v255_v14  ;;  %v258_v18 = vsel %vm254_vm4, %v207_v12, -inf  ;;  %v219_v19 = vsel %vm182_vm3, %v1341_v15, -inf  ;;  %v218_v20 = vsel %vm182_vm3, %v1344_v16, -inf  ;;  %v221_v23 = vsel %vm1313_vm2, %v1341_v15, -inf }
  0x3c   : > { %v294_v21 = vsel %vm254_vm4, %v219_v19, -inf  ;;  %v291_v22 = vsel %vm254_vm4, %v218_v20, -inf  ;;  %v220_v24 = vsel %vm1313_vm2, %v1344_v16, -inf  ;;  %v300_v27 = vsel %vm254_vm4, %v221_v23, -inf }
  0x3d   : > { %v297_v28 = vsel %vm254_vm4, %v220_v24, -inf  ;;  %v231_v29 = vsel %vm182_vm3, %v1363_v25, -inf  ;;  %v230_v30 = vsel %vm182_vm3, %v1366_v26, -inf  ;;  %vm187_vm9 = vcmp.lt.s32.totalorder %v1305_v1, 18 }
  0x3e   : > { %v330_v34 = vsel %vm254_vm4, %v231_v29, -inf  ;;  %v327_v35 = vsel %vm254_vm4, %v230_v30, -inf  ;;  %v233_v36 = vsel %vm1313_vm2, %v1363_v25, -inf  ;;  %v232_v37 = vsel %vm1313_vm2, %v1366_v26, -inf  ;;  %vm1410_vm10 = vmand %vm181_vm8, %vm187_vm9 }
  0x3f   : > { %265 = vmax.xlane.f32.xlu1 %v264_v17  ;;  %259 = vmax.xlane.f32.xlu0 %v258_v18  ;;  %v243_v38 = vsel %vm182_vm3, %v1379_v31, -inf  ;;  %v242_v39 = vsel %vm182_vm3, %v1382_v32, -inf  ;;  %v214_v40 = vsel %vm1384_vm7, %v1321_v7, -inf  ;;  %vm178_vm11 = vcmp.ge.s32.totalorder %v1305_v1, 6 }
  0x40   : > { %v1408_v41 = vsel %vm254_vm4, %v214_v40, -inf  ;;  %vm184_vm12 = vcmp.lt.s32.totalorder %v1305_v1, 9  ;;  %v336_v43 = vsel %vm254_vm4, %v233_v36, -inf  ;;  %v333_v44 = vsel %vm254_vm4, %v232_v37, -inf }
  0x41   : > { %v366_v45 = vsel %vm254_vm4, %v243_v38, -inf  ;;  %v363_v46 = vsel %vm254_vm4, %v242_v39, -inf  ;;  %v217_v47 = vsel %vm1410_vm10, %v1324_v8, -inf  ;;  %v216_v48 = vsel %vm1410_vm10, %v1321_v7, -inf  ;;  %vm1478_vm13 = vmand %vm178_vm11, %vm184_vm12 }
  0x42   : > { %v229_v49 = vsel %vm1410_vm10, %v1341_v15, -inf  ;;  %v228_v50 = vsel %vm1410_vm10, %v1344_v16, -inf  ;;  %v1433_v51 = vsel %vm254_vm4, %v217_v47, -inf  ;;  %v1436_v52 = vsel %vm254_vm4, %v216_v48, -inf }
  0x43   : > { %295 = vmax.xlane.f32.xlu1 %v294_v21  ;;  %292 = vmax.xlane.f32.xlu0 %v291_v22  ;;  %v1439_v53 = vsel %vm254_vm4, %v229_v49, -inf  ;;  %v1442_v54 = vsel %vm254_vm4, %v228_v50, -inf  ;;  %v241_v55 = vsel %vm1410_vm10, %v1363_v25, -inf  ;;  %v240_v56 = vsel %vm1410_vm10, %v1366_v26, -inf }
  0x44   : > { %v253_v57 = vsel %vm1410_vm10, %v1379_v31, -inf  ;;  %v252_v58 = vsel %vm1410_vm10, %v1382_v32, -inf  ;;  %v1457_v59 = vsel %vm254_vm4, %v241_v55, -inf  ;;  %v1460_v60 = vsel %vm254_vm4, %v240_v56, -inf }
  0x45   : > { %v1463_v61 = vsel %vm254_vm4, %v253_v57, -inf  ;;  %v1466_v62 = vsel %vm254_vm4, %v252_v58, -inf  ;;  %v245_v63 = vsel %vm1313_vm2, %v1379_v31, -inf  ;;  %v244_v0 = vsel %vm1313_vm2, %v1382_v32, -inf }
  0x46   : > { %v372_v4 = vsel %vm254_vm4, %v245_v63, -inf  ;;  %v369_v9 = vsel %vm254_vm4, %v244_v0, -inf  ;;  %v211_v10 = vsel %vm1478_vm13, %v1324_v8, -inf  ;;  %v210_v11 = vsel %vm1478_vm13, %v1321_v7, -inf }
  0x47   : > { %301 = vmax.xlane.f32.xlu1 %v300_v27  ;;  %298 = vmax.xlane.f32.xlu0 %v297_v28  ;;  %v270_v12 = vsel %vm254_vm4, %v211_v10, -inf  ;;  %v267_v13 = vsel %vm254_vm4, %v210_v11, -inf  ;;  %v223_v14 = vsel %vm1478_vm13, %v1341_v15, -inf  ;;  %v222_v17 = vsel %vm1478_vm13, %v1344_v16, -inf }
  0x48   : > { %v306_v18 = vsel %vm254_vm4, %v223_v14, -inf  ;;  %v303_v19 = vsel %vm254_vm4, %v222_v17, -inf  ;;  %v235_v20 = vsel %vm1478_vm13, %v1363_v25, -inf  ;;  %v234_v21 = vsel %vm1478_vm13, %v1366_v26, -inf }
  0x49   : > { %vm179_vm14 = vcmp.ge.s32.totalorder %v1305_v1, 9  ;;  %vm185_vm15 = vcmp.lt.s32.totalorder %v1305_v1, 12  ;;  %v342_v22 = vsel %vm254_vm4, %v235_v20, -inf  ;;  %v339_v23 = vsel %vm254_vm4, %v234_v21, -inf }
  0x4a   : > { %v247_v24 = vsel %vm1478_vm13, %v1379_v31, -inf  ;;  %v246_v27 = vsel %vm1478_vm13, %v1382_v32, -inf  ;;  %vm1516_vm0 = vmand %vm179_vm14, %vm185_vm15  ;;  %v215_v55 = vsel %vm1384_vm7, %v1324_v8, -inf  ;;  %v227_v57 = vsel %vm1384_vm7, %v1341_v15, -inf }
  0x4b   : > { %331 = vmax.xlane.f32.xlu1 %v330_v34  ;;  %328 = vmax.xlane.f32.xlu0 %v327_v35  ;;  %v378_v29 = vsel %vm254_vm4, %v247_v24, -inf  ;;  %v375_v30 = vsel %vm254_vm4, %v246_v27, -inf  ;;  %v213_v34 = vsel %vm1516_vm0, %v1324_v8, -inf  ;;  %v212_v35 = vsel %vm1516_vm0, %v1321_v7, -inf }
  0x4c   : > { %v276_v36 = vsel %vm254_vm4, %v213_v34, -inf  ;;  %v273_v37 = vsel %vm254_vm4, %v212_v35, -inf  ;;  %v225_v38 = vsel %vm1516_vm0, %v1341_v15, -inf  ;;  %v224_v39 = vsel %vm1516_vm0, %v1344_v16, -inf }
  0x4d   : > { %v312_v40 = vsel %vm254_vm4, %v225_v38, -inf  ;;  %v309_v7 = vsel %vm254_vm4, %v224_v39, -inf  ;;  %v249_v47 = vsel %vm1516_vm0, %v1379_v31, -inf  ;;  %v248_v48 = vsel %vm1516_vm0, %v1382_v32, -inf }
  0x4e   : > { %v384_v49 = vsel %vm254_vm4, %v249_v47, -inf  ;;  %v381_v50 = vsel %vm254_vm4, %v248_v48, -inf  ;;  %v282_v56 = vsel %vm254_vm4, %v215_v55, -inf  ;;  %v226_v58 = vsel %vm1384_vm7, %v1344_v16, -inf }
  0x4f   : > { %337 = vmax.xlane.f32.xlu1 %v336_v43  ;;  %334 = vmax.xlane.f32.xlu0 %v333_v44  ;;  %v237_v43 = vsel %vm1516_vm0, %v1363_v25, -inf  ;;  %v236_v44 = vsel %vm1516_vm0, %v1366_v26, -inf  ;;  %v318_v63 = vsel %vm254_vm4, %v227_v57, -inf  ;;  %v315_v0 = vsel %vm254_vm4, %v226_v58, -inf }
  0x50   : > { %v239_v8 = vsel %vm1384_vm7, %v1363_v25, -inf  ;;  %vm456_vm1 = vcmask 130112   ;;  %vm667_vm5 = vcmask 1042434   ;;  %vm669_vm6 = vcmask 1043459  }
  0x51   : > { %v354_v15 = vsel %vm254_vm4, %v239_v8, -inf  ;;  %vm671_vm8 = vcmask 1044484   ;;  %vm673_vm9 = vcmask 1045509   ;;  %vm718_vm11 = vcmask 128000  }
  0x53   : > { %367 = vmax.xlane.f32.xlu1 %v366_v45  ;;  %364 = vmax.xlane.f32.xlu0 %v363_v46  ;;  %v348_v45 = vsel %vm254_vm4, %v237_v43, -inf  ;;  %v345_v46 = vsel %vm254_vm4, %v236_v44, -inf }
  0x57   : > { %373 = vmax.xlane.f32.xlu1 %v372_v4  ;;  %370 = vmax.xlane.f32.xlu0 %v369_v9  ;;  %v238_v4 = vsel %vm1384_vm7, %v1366_v26, -inf  ;;  %v250_v9 = vsel %vm1384_vm7, %v1382_v32, -inf }
  0x58   : > { %v351_v16 = vsel %vm254_vm4, %v238_v4, -inf  ;;  %v387_v26 = vsel %vm254_vm4, %v250_v9, -inf }
  0x5b   : > { %271 = vmax.xlane.f32.xlu1 %v270_v12  ;;  %268 = vmax.xlane.f32.xlu0 %v267_v13 }
  0x5f   : > { %307 = vmax.xlane.f32.xlu1 %v306_v18  ;;  %304 = vmax.xlane.f32.xlu0 %v303_v19 }
  0x63   : > { %343 = vmax.xlane.f32.xlu1 %v342_v22  ;;  %340 = vmax.xlane.f32.xlu0 %v339_v23 }
  0x67   : > { %379 = vmax.xlane.f32.xlu1 %v378_v29  ;;  %376 = vmax.xlane.f32.xlu0 %v375_v30 }
  0x6b   : > { %277 = vmax.xlane.f32.xlu1 %v276_v36  ;;  %274 = vmax.xlane.f32.xlu0 %v273_v37 }
  0x6f   : > { %313 = vmax.xlane.f32.xlu1 %v312_v40  ;;  %310 = vmax.xlane.f32.xlu0 %v309_v7 }
  0x73   : > { %349 = vmax.xlane.f32.xlu1 %v348_v45  ;;  %346 = vmax.xlane.f32.xlu0 %v345_v46 }
  0x77   : > { %385 = vmax.xlane.f32.xlu1 %v384_v49  ;;  %382 = vmax.xlane.f32.xlu0 %v381_v50 }
  0x7b   : > { %283 = vmax.xlane.f32.xlu1 %v282_v56  ;;  %280 = vmax.xlane.f32.xlu0 %v1408_v41  ;;  %v251_v41 = vsel %vm1384_vm7, %v1379_v31, -inf }
  0x7c   : > { %v390_v25 = vsel %vm254_vm4, %v251_v41, -inf  ;;  %vm665_vm4 = vcmask 1041409  }
  0x7f   : > { %319 = vmax.xlane.f32.xlu1 %v318_v63  ;;  %316 = vmax.xlane.f32.xlu0 %v315_v0 }
  0x83   : > { %355 = vmax.xlane.f32.xlu1 %v354_v15  ;;  %352 = vmax.xlane.f32.xlu0 %v351_v16 }
  0x87   : > { %391 = vmax.xlane.f32.xlu1 %v390_v25  ;;  %388 = vmax.xlane.f32.xlu0 %v387_v26 }
  0x8b   : > { %289 = vmax.xlane.f32.xlu1 %v1433_v51  ;;  %286 = vmax.xlane.f32.xlu0 %v1436_v52 }
  0x8f   : > { %325 = vmax.xlane.f32.xlu1 %v1439_v53  ;;  %322 = vmax.xlane.f32.xlu0 %v1442_v54 }
  0x93   : > { %361 = vmax.xlane.f32.xlu1 %v1457_v59  ;;  %358 = vmax.xlane.f32.xlu0 %v1460_v60 }
  0x97   : > { %397 = vmax.xlane.f32.xlu1 %v1463_v61  ;;  %394 = vmax.xlane.f32.xlu0 %v1466_v62 }
  0xc8   : > { %v263_v31 = vpop.xlane.xlu1 %262  ;;  %v257_v32 = vpop.xlane.xlu0 %256 }
  0xc9   : > { %v461_v52 = vrot.slane %v263_v31, %v1310_v3  ;;  %v450_v53 = vrot.slane %v257_v32, %v1310_v3 }
  0xcc   : > { %v266_v10 = vpop.xlane.xlu1 %265  ;;  %v260_v51 = vpop.xlane.xlu0 %259 }
  0xcd   : > { %v465_v54 = vrot.slane %v266_v10, %v1318_v6  ;;  %v455_v59 = vrot.slane %v260_v51, %v1318_v6 }
  0xcf   : > { %v466_v60 = vsel %vm456_vm1, %v465_v54, %v461_v52  ;;  %v457_v61 = vsel %vm456_vm1, %v455_v59, %v450_v53 }
  0xd0   : > { %v666_v62 = vsel %vm665_vm4, %v466_v60, %v457_v61  ;;  %v296_v11 = vpop.xlane.xlu1 %295  ;;  %v293_v12 = vpop.xlane.xlu0 %292 }
  0xd1   : > { %v510_v13 = vrot.slane %v296_v11, %v1318_v6  ;;  %v506_v14 = vrot.slane %v293_v12, %v1310_v3 }
  0xd3   : > { %v511_v17 = vsel %vm456_vm1, %v510_v13, %v506_v14 }
  0xd4   : > { %v302_v18 = vpop.xlane.xlu1 %301  ;;  %v299_v19 = vpop.xlane.xlu0 %298 }
  0xd5   : > { %v519_v20 = vrot.slane %v302_v18, %v1318_v6  ;;  %v515_v21 = vrot.slane %v299_v19, %v1310_v3 }
  0xd7   : > { %v520_v22 = vsel %vm456_vm1, %v519_v20, %v515_v21 }
  0xd8   : > { %v675_v23 = vsel %vm665_vm4, %v520_v22, %v511_v17  ;;  %v332_v24 = vpop.xlane.xlu1 %331  ;;  %v329_v27 = vpop.xlane.xlu0 %328 }
  0xd9   : > { %v564_v29 = vrot.slane %v332_v24, %v1318_v6  ;;  %v560_v30 = vrot.slane %v329_v27, %v1310_v3 }
  0xdb   : > { %v565_v34 = vsel %vm456_vm1, %v564_v29, %v560_v30 }
  0xdc   : > { %v338_v35 = vpop.xlane.xlu1 %337  ;;  %v335_v36 = vpop.xlane.xlu0 %334 }
  0xdd   : > { %v573_v37 = vrot.slane %v338_v35, %v1318_v6  ;;  %v569_v38 = vrot.slane %v335_v36, %v1310_v3 }
  0xdf   : > { %v574_v39 = vsel %vm456_vm1, %v573_v37, %v569_v38 }
  0xe0   : > { %v680_v40 = vsel %vm665_vm4, %v574_v39, %v565_v34  ;;  %v368_v7 = vpop.xlane.xlu1 %367  ;;  %v365_v43 = vpop.xlane.xlu0 %364 }
  0xe1   : > { %v618_v44 = vrot.slane %v368_v7, %v1318_v6  ;;  %v614_v45 = vrot.slane %v365_v43, %v1310_v3 }
  0xe3   : > { %v619_v46 = vsel %vm456_vm1, %v618_v44, %v614_v45 }
  0xe4   : > { %v374_v47 = vpop.xlane.xlu1 %373  ;;  %v371_v48 = vpop.xlane.xlu0 %370 }
  0xe5   : > { %v627_v49 = vrot.slane %v374_v47, %v1318_v6  ;;  %v623_v50 = vrot.slane %v371_v48, %v1310_v3 }
  0xe7   : > { %v628_v55 = vsel %vm456_vm1, %v627_v49, %v623_v50 }
  0xe8   : > { %v685_v56 = vsel %vm665_vm4, %v628_v55, %v619_v46  ;;  %v272_v57 = vpop.xlane.xlu1 %271  ;;  %v269_v58 = vpop.xlane.xlu0 %268 }
  0xe9   : > { %v474_v63 = vrot.slane %v272_v57, %v1318_v6  ;;  %v470_v0 = vrot.slane %v269_v58, %v1310_v3 }
  0xeb   : > { %v475_v8 = vsel %vm456_vm1, %v474_v63, %v470_v0 }
  0xec   : > { %v668_v4 = vsel %vm667_vm5, %v475_v8, %v666_v62  ;;  %v308_v15 = vpop.xlane.xlu1 %307  ;;  %v305_v16 = vpop.xlane.xlu0 %304 }
  0xed   : > { %v528_v41 = vrot.slane %v308_v15, %v1318_v6  ;;  %v524_v9 = vrot.slane %v305_v16, %v1310_v3 }
  0xef   : > { %v529_v25 = vsel %vm456_vm1, %v528_v41, %v524_v9 }
  0xf0   : > { %v676_v26 = vsel %vm667_vm5, %v529_v25, %v675_v23  ;;  %v344_v31 = vpop.xlane.xlu1 %343  ;;  %v341_v32 = vpop.xlane.xlu0 %340 }
  0xf1   : > { %v582_v10 = vrot.slane %v344_v31, %v1318_v6  ;;  %v578_v51 = vrot.slane %v341_v32, %v1310_v3 }
  0xf3   : > { %v583_v52 = vsel %vm456_vm1, %v582_v10, %v578_v51 }
  0xf4   : > { %v681_v53 = vsel %vm667_vm5, %v583_v52, %v680_v40  ;;  %v380_v54 = vpop.xlane.xlu1 %379  ;;  %v377_v59 = vpop.xlane.xlu0 %376 }
  0xf5   : > { %v636_v60 = vrot.slane %v380_v54, %v1318_v6  ;;  %v632_v61 = vrot.slane %v377_v59, %v1310_v3 }
  0xf7   : > { %v637_v62 = vsel %vm456_vm1, %v636_v60, %v632_v61 }
  0xf8   : > { %v686_v11 = vsel %vm667_vm5, %v637_v62, %v685_v56  ;;  %v278_v12 = vpop.xlane.xlu1 %277  ;;  %v275_v13 = vpop.xlane.xlu0 %274 }
  0xf9   : > { %v483_v14 = vrot.slane %v278_v12, %v1318_v6  ;;  %v479_v17 = vrot.slane %v275_v13, %v1310_v3 }
  0xfb   : > { %v484_v18 = vsel %vm456_vm1, %v483_v14, %v479_v17 }
  0xfc   : > { %v670_v19 = vsel %vm669_vm6, %v484_v18, %v668_v4  ;;  %v314_v20 = vpop.xlane.xlu1 %313  ;;  %v311_v21 = vpop.xlane.xlu0 %310 }
  0xfd   : > { %v537_v22 = vrot.slane %v314_v20, %v1318_v6  ;;  %v533_v23 = vrot.slane %v311_v21, %v1310_v3 }
  0xff   : > { %v538_v24 = vsel %vm456_vm1, %v537_v22, %v533_v23 }
 0x100   : > { %v677_v27 = vsel %vm669_vm6, %v538_v24, %v676_v26  ;;  %v350_v29 = vpop.xlane.xlu1 %349  ;;  %v347_v30 = vpop.xlane.xlu0 %346 }
 0x101   : > { %v591_v34 = vrot.slane %v350_v29, %v1318_v6  ;;  %v587_v35 = vrot.slane %v347_v30, %v1310_v3 }
 0x103   : > { %v592_v36 = vsel %vm456_vm1, %v591_v34, %v587_v35 }
 0x104   : > { %v682_v37 = vsel %vm669_vm6, %v592_v36, %v681_v53  ;;  %v386_v38 = vpop.xlane.xlu1 %385  ;;  %v383_v39 = vpop.xlane.xlu0 %382 }
 0x105   : > { %v645_v40 = vrot.slane %v386_v38, %v1318_v6  ;;  %v641_v7 = vrot.slane %v383_v39, %v1310_v3 }
 0x107   : > { %v646_v43 = vsel %vm456_vm1, %v645_v40, %v641_v7 }
 0x108   : > { %v687_v44 = vsel %vm669_vm6, %v646_v43, %v686_v11  ;;  %v284_v45 = vpop.xlane.xlu1 %283  ;;  %v281_v46 = vpop.xlane.xlu0 %280 }
 0x109   : > { %v492_v47 = vrot.slane %v284_v45, %v1318_v6  ;;  %v488_v48 = vrot.slane %v281_v46, %v1310_v3 }
 0x10b   : > { %v493_v49 = vsel %vm456_vm1, %v492_v47, %v488_v48 }
 0x10c   : > { %v672_v50 = vsel %vm671_vm8, %v493_v49, %v670_v19  ;;  %v320_v55 = vpop.xlane.xlu1 %319  ;;  %v317_v56 = vpop.xlane.xlu0 %316 }
 0x10d   : > { %v546_v57 = vrot.slane %v320_v55, %v1318_v6  ;;  %v542_v58 = vrot.slane %v317_v56, %v1310_v3 }
 0x10f   : > { %v547_v63 = vsel %vm456_vm1, %v546_v57, %v542_v58 }
 0x110   : > { %v678_v0 = vsel %vm671_vm8, %v547_v63, %v677_v27  ;;  %v356_v8 = vpop.xlane.xlu1 %355  ;;  %v353_v4 = vpop.xlane.xlu0 %352 }
 0x111   : > { %v600_v15 = vrot.slane %v356_v8, %v1318_v6  ;;  %v596_v16 = vrot.slane %v353_v4, %v1310_v3 }
 0x113   : > { %v601_v41 = vsel %vm456_vm1, %v600_v15, %v596_v16 }
 0x114   : > { %v683_v9 = vsel %vm671_vm8, %v601_v41, %v682_v37  ;;  %v392_v25 = vpop.xlane.xlu1 %391  ;;  %v389_v26 = vpop.xlane.xlu0 %388 }
 0x115   : > { %v654_v31 = vrot.slane %v392_v25, %v1318_v6  ;;  %v650_v32 = vrot.slane %v389_v26, %v1310_v3 }
 0x117   : > { %v655_v10 = vsel %vm456_vm1, %v654_v31, %v650_v32 }
 0x118   : > { %v688_v51 = vsel %vm671_vm8, %v655_v10, %v687_v44  ;;  %v290_v52 = vpop.xlane.xlu1 %289  ;;  %v287_v53 = vpop.xlane.xlu0 %286 }
 0x119   : > { %v501_v54 = vrot.slane %v290_v52, %v1318_v6  ;;  %v497_v59 = vrot.slane %v287_v53, %v1310_v3 }
 0x11b   : > { %v502_v60 = vsel %vm456_vm1, %v501_v54, %v497_v59 }
 0x11c   : > { %v1671_v61 = vsel %vm673_vm9, %v502_v60, %v672_v50  ;;  %v326_v62 = vpop.xlane.xlu1 %325  ;;  %v323_v11 = vpop.xlane.xlu0 %322 }
 0x11d   : > { %v555_v12 = vrot.slane %v326_v62, %v1318_v6  ;;  %v551_v13 = vrot.slane %v323_v11, %v1310_v3  ;;  %v695_v14 = vsel %vm1313_vm2, %v1671_v61, -inf  ;;  %v694_v17 = vsel %vm182_vm3, %v1671_v61, -inf }
 0x11e   : > { %v722_v18 = vsel %vm718_vm11, %v695_v14, -inf  ;;  %v719_v19 = vsel %vm718_vm11, %v694_v17, -inf  ;;  %v696_v57 = vsel %vm1478_vm13, %v1671_v61, -inf  ;;  %v697_v15 = vsel %vm1516_vm0, %v1671_v61, -inf }
 0x11f   : > { %v556_v20 = vsel %vm456_vm1, %v555_v12, %v551_v13  ;;  %723 = vmax.xlane.f32.xlu1 %v722_v18  ;;  %720 = vmax.xlane.f32.xlu0 %v719_v19  ;;  %v725_v58 = vsel %vm718_vm11, %v696_v57, -inf  ;;  %v728_v41 = vsel %vm718_vm11, %v697_v15, -inf  ;;  %v698_v32 = vsel %vm1384_vm7, %v1671_v61, -inf }
 0x120   : > { %v1685_v21 = vsel %vm673_vm9, %v556_v20, %v678_v0  ;;  %v362_v22 = vpop.xlane.xlu1 %361  ;;  %v359_v23 = vpop.xlane.xlu0 %358  ;;  %v699_v60 = vsel %vm1410_vm10, %v1671_v61, -inf }
 0x121   : > { %v609_v24 = vrot.slane %v362_v22, %v1318_v6  ;;  %v605_v27 = vrot.slane %v359_v23, %v1310_v3  ;;  %v701_v29 = vsel %vm1313_vm2, %v1685_v21, -inf  ;;  %v700_v30 = vsel %vm182_vm3, %v1685_v21, -inf }
 0x122   : > { %v740_v34 = vsel %vm718_vm11, %v701_v29, -inf  ;;  %v737_v35 = vsel %vm718_vm11, %v700_v30, -inf  ;;  %v702_v56 = vsel %vm1478_vm13, %v1685_v21, -inf  ;;  %v703_v4 = vsel %vm1516_vm0, %v1685_v21, -inf }
 0x123   : > { %v610_v36 = vsel %vm456_vm1, %v609_v24, %v605_v27  ;;  %741 = vmax.xlane.f32.xlu1 %v740_v34  ;;  %738 = vmax.xlane.f32.xlu0 %v737_v35  ;;  %v743_v5 = vsel %vm718_vm11, %v702_v56, -inf  ;;  %v746_v16 = vsel %vm718_vm11, %v703_v4, -inf  ;;  %v704_v31 = vsel %vm1384_vm7, %v1685_v21, -inf }
 0x124   : > { %v1699_v37 = vsel %vm673_vm9, %v610_v36, %v683_v9  ;;  %v398_v38 = vpop.xlane.xlu1 %397  ;;  %v395_v39 = vpop.xlane.xlu0 %394  ;;  %v749_v10 = vsel %vm718_vm11, %v704_v31, -inf  ;;  %v705_v59 = vsel %vm1410_vm10, %v1685_v21, -inf  ;;  %v734_v11 = vsel %vm718_vm11, %v699_v60, -inf }
 0x125   : > { %v663_v40 = vrot.slane %v398_v38, %v1318_v6  ;;  %v659_v7 = vrot.slane %v395_v39, %v1310_v3  ;;  %v707_v43 = vsel %vm1313_vm2, %v1699_v37, -inf  ;;  %v706_v44 = vsel %vm182_vm3, %v1699_v37, -inf }
 0x126   : > { %v758_v45 = vsel %vm718_vm11, %v707_v43, -inf  ;;  %v755_v46 = vsel %vm718_vm11, %v706_v44, -inf  ;;  %v708_v63 = vsel %vm1478_vm13, %v1699_v37, -inf  ;;  %v709_v9 = vsel %vm1516_vm0, %v1699_v37, -inf }
 0x127   : > { %v664_v47 = vsel %vm456_vm1, %v663_v40, %v659_v7  ;;  %759 = vmax.xlane.f32.xlu1 %v758_v45  ;;  %756 = vmax.xlane.f32.xlu0 %v755_v46  ;;  %v761_v8 = vsel %vm718_vm11, %v708_v63, -inf  ;;  %v764_v26 = vsel %vm718_vm11, %v709_v9, -inf  ;;  %v710_v52 = vsel %vm1384_vm7, %v1699_v37, -inf }
 0x128   : > { %v689_v6 = vsel %vm673_vm9, %v664_v47, %v688_v51  ;;  %v731_v51 = vsel %vm718_vm11, %v698_v32, -inf  ;;  %v767_v54 = vsel %vm718_vm11, %v710_v52, -inf  ;;  %v752_v62 = vsel %vm718_vm11, %v705_v59, -inf }
 0x129   : > { %v713_v48 = vsel %vm1313_vm2, %v689_v6, -inf  ;;  %v712_v49 = vsel %vm182_vm3, %v689_v6, -inf  ;;  %v714_v1 = vsel %vm1478_vm13, %v689_v6, -inf  ;;  %v715_v2 = vsel %vm1516_vm0, %v689_v6, -inf }
 0x12a   : > { %v776_v50 = vsel %vm718_vm11, %v713_v48, -inf  ;;  %v773_v55 = vsel %vm718_vm11, %v712_v49, -inf  ;;  %v779_v0 = vsel %vm718_vm11, %v714_v1, -inf  ;;  %v782_v25 = vsel %vm718_vm11, %v715_v2, -inf }
 0x12b   : > { %777 = vmax.xlane.f32.xlu1 %v776_v50  ;;  %774 = vmax.xlane.f32.xlu0 %v773_v55  ;;  %v716_v28 = vsel %vm1384_vm7, %v689_v6, -inf  ;;  %v717_v33 = vsel %vm1410_vm10, %v689_v6, -inf  ;;  %v711_v12 = vsel %vm1410_vm10, %v1699_v37, -inf  ;;  %vm935_vm2 = vcmask 46080  }
 0x12c   : > { %v785_v53 = vsel %vm718_vm11, %v716_v28, -inf  ;;  %v788_v13 = vsel %vm718_vm11, %v717_v33, -inf  ;;  %v770_v14 = vsel %vm718_vm11, %v711_v12, -inf }
 0x12f   : > { %744 = vmax.xlane.f32.xlu1 %v743_v5  ;;  %726 = vmax.xlane.f32.xlu0 %v725_v58 }
 0x133   : > { %780 = vmax.xlane.f32.xlu1 %v779_v0  ;;  %762 = vmax.xlane.f32.xlu0 %v761_v8 }
 0x137   : > { %747 = vmax.xlane.f32.xlu1 %v746_v16  ;;  %729 = vmax.xlane.f32.xlu0 %v728_v41 }
 0x13b   : > { %783 = vmax.xlane.f32.xlu1 %v782_v25  ;;  %765 = vmax.xlane.f32.xlu0 %v764_v26 }
 0x13f   : > { %750 = vmax.xlane.f32.xlu1 %v749_v10  ;;  %732 = vmax.xlane.f32.xlu0 %v731_v51 }
 0x143   : > { %786 = vmax.xlane.f32.xlu1 %v785_v53  ;;  %768 = vmax.xlane.f32.xlu0 %v767_v54 }
 0x147   : > { %753 = vmax.xlane.f32.xlu1 %v752_v62  ;;  %735 = vmax.xlane.f32.xlu0 %v734_v11 }
 0x14b   : > { %789 = vmax.xlane.f32.xlu1 %v788_v13  ;;  %771 = vmax.xlane.f32.xlu0 %v770_v14 }
 0x1ac   : > { %v724_v61 = vpop.xlane.xlu1 %723  ;;  %v721_v17 = vpop.xlane.xlu0 %720 }
 0x1ad   : > { %v822_v39 = vrot.slane %v724_v61, %v1310_v3  ;;  %v818_v40 = vrot.slane %v721_v17, %v1310_v3 }
 0x1af   : > { %v911_v49 = vsel %vm665_vm4, %v822_v39, %v818_v40 }
 0x1b0   : > { %v742_v18 = vpop.xlane.xlu1 %741  ;;  %v739_v19 = vpop.xlane.xlu0 %738 }
 0x1b1   : > { %v846_v7 = vrot.slane %v742_v18, %v1310_v3  ;;  %v842_v43 = vrot.slane %v739_v19, %v1310_v3 }
 0x1b3   : > { %v916_v50 = vsel %vm665_vm4, %v846_v7, %v842_v43 }
 0x1b4   : > { %v760_v20 = vpop.xlane.xlu1 %759  ;;  %v757_v21 = vpop.xlane.xlu0 %756 }
 0x1b5   : > { %v870_v55 = vrot.slane %v760_v20, %v1310_v3  ;;  %v866_v56 = vrot.slane %v757_v21, %v1310_v3 }
 0x1b7   : > { %v921_v52 = vsel %vm665_vm4, %v870_v55, %v866_v56 }
 0x1b8   : > { %v778_v22 = vpop.xlane.xlu1 %777  ;;  %v775_v23 = vpop.xlane.xlu0 %774 }
 0x1b9   : > { %v894_v58 = vrot.slane %v778_v22, %v1310_v3  ;;  %v890_v1 = vrot.slane %v775_v23, %v1310_v3 }
 0x1bb   : > { %v926_v53 = vsel %vm665_vm4, %v894_v58, %v890_v1 }
 0x1bc   : > { %v745_v24 = vpop.xlane.xlu1 %744  ;;  %v727_v27 = vpop.xlane.xlu0 %726 }
 0x1bd   : > { %v850_v44 = vrot.slane %v745_v24, %v1310_v3  ;;  %v826_v45 = vrot.slane %v727_v27, %v1310_v3 }
 0x1bf   : > { %v917_v63 = vsel %vm667_vm5, %v850_v44, %v916_v50  ;;  %v912_v0 = vsel %vm667_vm5, %v826_v45, %v911_v49 }
 0x1c0   : > { %v781_v42 = vpop.xlane.xlu1 %780  ;;  %v763_v29 = vpop.xlane.xlu0 %762 }
 0x1c1   : > { %v898_v8 = vrot.slane %v781_v42, %v1310_v3  ;;  %v874_v4 = vrot.slane %v763_v29, %v1310_v3 }
 0x1c3   : > { %v927_v60 = vsel %vm667_vm5, %v898_v8, %v926_v53  ;;  %v922_v62 = vsel %vm667_vm5, %v874_v4, %v921_v52 }
 0x1c4   : > { %v748_v30 = vpop.xlane.xlu1 %747  ;;  %v730_v34 = vpop.xlane.xlu0 %729 }
 0x1c5   : > { %v854_v46 = vrot.slane %v748_v30, %v1310_v3  ;;  %v830_v47 = vrot.slane %v730_v34, %v1310_v3 }
 0x1c7   : > { %v918_v15 = vsel %vm669_vm6, %v854_v46, %v917_v63  ;;  %v913_v16 = vsel %vm669_vm6, %v830_v47, %v912_v0 }
 0x1c8   : > { %v784_v35 = vpop.xlane.xlu1 %783  ;;  %v766_v36 = vpop.xlane.xlu0 %765 }
 0x1c9   : > { %v902_v9 = vrot.slane %v784_v35, %v1310_v3  ;;  %v878_v25 = vrot.slane %v766_v36, %v1310_v3 }
 0x1cb   : > { %v928_v12 = vsel %vm669_vm6, %v902_v9, %v927_v60  ;;  %v923_v13 = vsel %vm669_vm6, %v878_v25, %v922_v62 }
 0x1cc   : > { %v751_v37 = vpop.xlane.xlu1 %750  ;;  %v733_v38 = vpop.xlane.xlu0 %732 }
 0x1cd   : > { %v858_v57 = vrot.slane %v751_v37, %v1310_v3  ;;  %v834_v5 = vrot.slane %v733_v38, %v1310_v3 }
 0x1cf   : > { %v919_v32 = vsel %vm671_vm8, %v858_v57, %v918_v15  ;;  %v914_v10 = vsel %vm671_vm8, %v834_v5, %v913_v16 }
 0x1d0   : > { %v787_v6 = vpop.xlane.xlu1 %786  ;;  %v769_v48 = vpop.xlane.xlu0 %768 }
 0x1d1   : > { %v906_v51 = vrot.slane %v787_v6, %v1310_v3  ;;  %v882_v28 = vrot.slane %v769_v48, %v1310_v3 }
 0x1d3   : > { %v929_v17 = vsel %vm671_vm8, %v906_v51, %v928_v12  ;;  %v924_v18 = vsel %vm671_vm8, %v882_v28, %v923_v13 }
 0x1d4   : > { %v754_v41 = vpop.xlane.xlu1 %753  ;;  %v736_v2 = vpop.xlane.xlu0 %735 }
 0x1d5   : > { %v862_v26 = vrot.slane %v754_v41, %v1310_v3  ;;  %v838_v31 = vrot.slane %v736_v2, %v1310_v3 }
 0x1d7   : > { %v920_v54 = vsel %vm673_vm9, %v862_v26, %v919_v32  ;;  %v915_v59 = vsel %vm673_vm9, %v838_v31, %v914_v10 }
 0x1d8   : > { %937 = vst.msk [vmem:[%s164_s25 + $0x8] sm:$0x3f] %vm935_vm2, %v920_v54  ;;  %936 = vst.msk [vmem:[%s164_s25] sm:$0x3f] %vm935_vm2, %v915_v59  ;;  %v790_v11 = vpop.xlane.xlu1 %789  ;;  %v772_v33 = vpop.xlane.xlu0 %771 }
 0x1d9   : > { %v910_v14 = vrot.slane %v790_v11, %v1310_v3  ;;  %v886_v61 = vrot.slane %v772_v33, %v1310_v3 }
 0x1db   : > { %v930_v19 = vsel %vm673_vm9, %v910_v14, %v929_v17  ;;  %v925_v20 = vsel %vm673_vm9, %v886_v61, %v924_v18 }
 0x1dc   : > { %939 = vst.msk [vmem:[%s164_s25 + $0x18] sm:$0x3f] %vm935_vm2, %v930_v19  ;;  %938 = vst.msk [vmem:[%s164_s25 + $0x10] sm:$0x3f] %vm935_vm2, %v925_v20 }
 0x1dd PF: > { %s14_s11 = sadd.s32 1, %s1187_s11   ;;  %s1865_s6 = smov %s1171_s7 }
 0x1de   : > { %p11_p9 = scmp.ge.s32.totalorder %s14_s11, 4   ;;  %s1866_s7 = smov %s1175_s8 }
 0x1df   : > { %s1867_s8 = smov %s1251_s18  ;;  %s1868_s9 = smov %s1183_s10 }
 0x1e0   : > { %s1869_s10 = smov %s1871_s13  ;;  %13 = sbr.rel (!%p11_p9) target bundleno = 4 (0x4), region = 64 }
 0x1e7   :  { %970 = vsyncpa [#allocation3], 1 }
 0x1e8   :  { %972 = vsyncpa [#allocation3 + $0x1], 1 }

</bundles_post_ra>
